<compile_context>
chip_gen: v7x
topology: tpu7x:2x2x1
jax: 0.10.0
libtpu: 0.0.40
codegen_flags: <defaults>
</compile_context>

<pallas_src>
import functools

import jax
import jax.numpy as jnp
from jax.experimental import pallas as pl
from jax.experimental.pallas import tpu as pltpu

# ---- module "config" (deterministic, in-script) -----------------------------
IGNORE_LABEL = -1
NUM_OUTPUTS = 1
BALANCE_WEIGHTS = (1.0,)
SB_WEIGHTS = 1.0


def _ce_kernel(score_ref, tgt_ref, sum_ref, cnt_ref, *,
               ignore_label, tile_h, num_rows_h):
    """Grid = (N, cdiv(H, tile_h)).

    score_ref: (C, TH, W)  logits for one image / H-tile (batch dim squeezed)
    tgt_ref:   (TH, W)     int32 targets
    sum_ref:   (TH, W)     f32 per-batch accumulator of -log p[target]
    cnt_ref:   (TH, W)     f32 per-batch accumulator of valid-pixel count
    """
    h = pl.program_id(1)

    @pl.when(h == 0)
    def _():
        sum_ref[...] = jnp.zeros_like(sum_ref)
        cnt_ref[...] = jnp.zeros_like(cnt_ref)

    t = tgt_ref[...]                                   # (TH, W) int32
    s = score_ref[...].astype(jnp.float32)             # (C, TH, W)
    num_classes = s.shape[0]

    # row-validity mask for a ragged final H tile (replaces wrapper jnp.pad)
    row = jax.lax.broadcasted_iota(jnp.int32, t.shape, 0)       # (TH, W)
    row_valid = (h * tile_h + row) < num_rows_h

    # Numerically stable log-softmax over the leading class axis, unrolled:
    # every step is an elementwise op on a lane-dense (TH, W) tile (VPU/EUP).
    m = s[0]
    for c in range(1, num_classes):
        m = jnp.maximum(m, s[c])

    sum_exp = jnp.zeros_like(m)
    picked = jnp.zeros_like(m)
    for c in range(num_classes):
        sh_c = s[c] - m
        sum_exp += jnp.exp(sh_c)
        # one-hot "gather" of the target class; never materialize full logp
        picked = jnp.where(t == c, sh_c, picked)

    nll = jnp.log(sum_exp) - picked                    # -log softmax[target]

    valid = (t != ignore_label) & row_valid
    # jnp.where is a select: any inf/NaN from masked-out rows is dropped.
    sum_ref[...] += jnp.where(valid, nll, 0.0)
    cnt_ref[...] += valid.astype(jnp.float32)


def _pick_tile_h(H, C, W, itemsize, target_block_bytes=2 * 1024 * 1024):
    """Largest H tile whose logits block is ~target_block_bytes.

    >= 0.5 MiB keeps the DMA engine fed; ~2 MiB (plus f32 temporaries and
    double-buffering) stays well inside v7x's 64 MiB VMEM.
    """
    rows = max(1, target_block_bytes // max(1, C * W * itemsize))
    if rows >= H:
        return H
    rows = max(8, (rows // 8) * 8)      # keep the (8, 128) tiling constraint
    return min(rows, H)


def cross_entropy_loss_pallas(score_nchw, target_nhw, *,
                              ignore_label=IGNORE_LABEL):
    """score_nchw: (N, C, H, W) float logits; target_nhw: (N, H, W) ints.

    Returns scalar f32: mean CE over non-ignored pixels.
    """
    N, C, H, W = score_nchw.shape
    target_nhw = target_nhw.astype(jnp.int32)

    tile_h = _pick_tile_h(H, C, W, score_nchw.dtype.itemsize)
    n_h_tiles = pl.cdiv(H, tile_h)

    kernel = functools.partial(_ce_kernel, ignore_label=ignore_label,
                               tile_h=tile_h, num_rows_h=H)

    out_shape = (jax.ShapeDtypeStruct((N, tile_h, W), jnp.float32),
                 jax.ShapeDtypeStruct((N, tile_h, W), jnp.float32))

    part_sum, part_cnt = pl.pallas_call(
        kernel,
        out_shape=out_shape,
        grid_spec=pltpu.PrefetchScalarGridSpec(
            num_scalar_prefetch=0,
            grid=(N, n_h_tiles),
            in_specs=[
                # (None -> squeezed batch dim) full C, tile H, full W on lanes
                pl.BlockSpec((None, C, tile_h, W), lambda n, h: (n, 0, h, 0)),
                pl.BlockSpec((None, tile_h, W), lambda n, h: (n, h, 0)),
            ],
            out_specs=[
                # resident per-batch accumulator across the h axis
                pl.BlockSpec((None, tile_h, W), lambda n, h: (n, 0, 0)),
                pl.BlockSpec((None, tile_h, W), lambda n, h: (n, 0, 0)),
            ],
        ),
        compiler_params=pltpu.CompilerParams(
            dimension_semantics=("parallel", "arbitrary"),
            vmem_limit_bytes=48 * 1024 * 1024,
        ),
    )(score_nchw, target_nhw)

    # tiny epilogue in plain JAX: global sum / valid count / divide
    return jnp.sum(part_sum) / jnp.sum(part_cnt)


def cross_entropy_module_forward(score_nchw, target_nhw):
    """Mirrors CrossEntropy.forward with NUM_OUTPUTS=1, BALANCE_WEIGHTS=(1.0,)."""
    scores = [score_nchw] if NUM_OUTPUTS == 1 else list(score_nchw)

    if len(BALANCE_WEIGHTS) == len(scores):
        return sum(w * cross_entropy_loss_pallas(x, target_nhw)
                   for w, x in zip(BALANCE_WEIGHTS, scores))
    elif len(scores) == 1:
        return SB_WEIGHTS * cross_entropy_loss_pallas(scores[0], target_nhw)
    else:
        raise ValueError("lengths of prediction and target are not identical!")


def _reference_loss(score_nchw, target_nhw, ignore_label=IGNORE_LABEL):
    """Pure-JAX reference mirroring nn.CrossEntropyLoss(ignore_index=...)."""
    N, C, H, W = score_nchw.shape
    s = jnp.transpose(score_nchw, (0, 2, 3, 1)).reshape(-1, C).astype(jnp.float32)
    t = target_nhw.reshape(-1).astype(jnp.int32)
    logp = jax.nn.log_softmax(s, axis=-1)
    valid = (t != ignore_label)
    t_safe = jnp.where(valid, t, 0)
    nll = -jnp.take_along_axis(logp, t_safe[:, None], axis=-1)[:, 0]
    nll = jnp.where(valid, nll, 0.0)
    return jnp.sum(nll) / jnp.sum(valid.astype(jnp.float32))


if __name__ == "__main__":
    key = jax.random.PRNGKey(0)
    k1, k2 = jax.random.split(key)

    N, C, H, W = 2, 4, 16, 16
    score = jax.random.normal(k1, (N, C, H, W), dtype=jnp.float32)
    # targets in [-1, C-1]; -1 is the ignore label
    target = jax.random.randint(k2, (N, H, W), -1, C, dtype=jnp.int32)

    loss = cross_entropy_module_forward(score, target)
    loss = jax.block_until_ready(loss)

    ref = jax.block_until_ready(_reference_loss(score, target))
    assert jnp.allclose(loss, ref, rtol=1e-5, atol=1e-5), (loss, ref)

    print("KERNEL_OK")
</pallas_src>

<mosaic_0001>
module attributes {stable_mosaic.version = 11 : i64} {
  func.func @_ce_kernel(%arg0: i32, %arg1: i32, %arg2: memref<1x4x16x16xf32, #tpu.memory_space<vmem>>, %arg3: memref<1x16x16xi32, #tpu.memory_space<vmem>>, %arg4: memref<1x16x16xf32, #tpu.memory_space<vmem>>, %arg5: memref<1x16x16xf32, #tpu.memory_space<vmem>>) attributes {dimension_semantics = [#tpu.dimension_semantics<parallel>, #tpu.dimension_semantics<arbitrary>], iteration_bounds = array<i64: 2, 1>, scalar_prefetch = 0 : i64, scratch_operands = 0 : i64, tpu.core_type = #tpu.core_type<tc>, window_params = [{transform_indices = @transform_0, window_bounds = array<i64: 1, 4, 16, 16>}, {transform_indices = @transform_1, window_bounds = array<i64: 1, 16, 16>}, {transform_indices = @transform_2, window_bounds = array<i64: 1, 16, 16>}, {transform_indices = @transform_3, window_bounds = array<i64: 1, 16, 16>}]} {
    %c0_i32 = arith.constant 0 : i32
    %0 = arith.cmpi eq, %arg1, %c0_i32 : i32
    %1 = arith.extui %0 : i1 to i32
    %c0_i32_0 = arith.constant 0 : i32
    %2 = arith.cmpi ne, %1, %c0_i32_0 : i32
    scf.if %2 {
      %cst_23 = arith.constant 0.000000e+00 : f32
      %79 = vector.broadcast %cst_23 : f32 to vector<16x16xf32>
      %c0_24 = arith.constant 0 : index
      %c0_25 = arith.constant 0 : index
      %c0_26 = arith.constant 0 : index
      %80 = vector.load %arg4[%c0_24, %c0_25, %c0_26] : memref<1x16x16xf32, #tpu.memory_space<vmem>>, vector<1x16x16xf32>
      %81 = vector.shape_cast %80 : vector<1x16x16xf32> to vector<16x16xf32>
      %82 = vector.shape_cast %79 : vector<16x16xf32> to vector<1x16x16xf32>
      tpu.vector_store %arg4[%c0_24, %c0_25, %c0_26], %82 {strides = array<i32>} : memref<1x16x16xf32, #tpu.memory_space<vmem>>, vector<1x16x16xf32>,
      %cst_27 = arith.constant 0.000000e+00 : f32
      %83 = vector.broadcast %cst_27 : f32 to vector<16x16xf32>
      %c0_28 = arith.constant 0 : index
      %c0_29 = arith.constant 0 : index
      %c0_30 = arith.constant 0 : index
      %84 = vector.load %arg5[%c0_28, %c0_29, %c0_30] : memref<1x16x16xf32, #tpu.memory_space<vmem>>, vector<1x16x16xf32>
      %85 = vector.shape_cast %84 : vector<1x16x16xf32> to vector<16x16xf32>
      %86 = vector.shape_cast %83 : vector<16x16xf32> to vector<1x16x16xf32>
      tpu.vector_store %arg5[%c0_28, %c0_29, %c0_30], %86 {strides = array<i32>} : memref<1x16x16xf32, #tpu.memory_space<vmem>>, vector<1x16x16xf32>,
    } else {
    }
    %c0 = arith.constant 0 : index
    %c0_1 = arith.constant 0 : index
    %c0_2 = arith.constant 0 : index
    %3 = vector.load %arg3[%c0, %c0_1, %c0_2] : memref<1x16x16xi32, #tpu.memory_space<vmem>>, vector<1x16x16xi32>
    %4 = vector.shape_cast %3 : vector<1x16x16xi32> to vector<16x16xi32>
    %c0_3 = arith.constant 0 : index
    %c0_4 = arith.constant 0 : index
    %c0_5 = arith.constant 0 : index
    %c0_6 = arith.constant 0 : index
    %5 = vector.load %arg2[%c0_3, %c0_4, %c0_5, %c0_6] : memref<1x4x16x16xf32, #tpu.memory_space<vmem>>, vector<1x4x16x16xf32>
    %6 = vector.shape_cast %5 : vector<1x4x16x16xf32> to vector<4x16x16xf32>
    %7 = tpu.iota {dimensions = array<i32: 0>} : vector<16x16xi32>
    %c16_i32 = arith.constant 16 : i32
    %8 = arith.muli %arg1, %c16_i32 : i32
    %9 = vector.broadcast %8 : i32 to vector<16x16xi32>
    %10 = arith.addi %9, %7 : vector<16x16xi32>
    %c16_i32_7 = arith.constant 16 : i32
    %11 = vector.broadcast %c16_i32_7 : i32 to vector<16x16xi32>
    %12 = arith.cmpi slt, %10, %11 : vector<16x16xi32>
    %13 = vector.extract_strided_slice %6 {offsets = [0, 0, 0], sizes = [1, 16, 16], strides = [1, 1, 1]} : vector<4x16x16xf32> to vector<1x16x16xf32>
    %14 = vector.shape_cast %13 : vector<1x16x16xf32> to vector<16x16xf32>
    %15 = vector.extract_strided_slice %6 {offsets = [1, 0, 0], sizes = [1, 16, 16], strides = [1, 1, 1]} : vector<4x16x16xf32> to vector<1x16x16xf32>
    %16 = vector.shape_cast %15 : vector<1x16x16xf32> to vector<16x16xf32>
    %17 = arith.maximumf %14, %16 : vector<16x16xf32>
    %18 = vector.extract_strided_slice %6 {offsets = [2, 0, 0], sizes = [1, 16, 16], strides = [1, 1, 1]} : vector<4x16x16xf32> to vector<1x16x16xf32>
    %19 = vector.shape_cast %18 : vector<1x16x16xf32> to vector<16x16xf32>
    %20 = arith.maximumf %17, %19 : vector<16x16xf32>
    %21 = vector.extract_strided_slice %6 {offsets = [3, 0, 0], sizes = [1, 16, 16], strides = [1, 1, 1]} : vector<4x16x16xf32> to vector<1x16x16xf32>
    %22 = vector.shape_cast %21 : vector<1x16x16xf32> to vector<16x16xf32>
    %23 = arith.maximumf %20, %22 : vector<16x16xf32>
    %cst = arith.constant 0.000000e+00 : f32
    %24 = vector.broadcast %cst : f32 to vector<16x16xf32>
    %cst_8 = arith.constant 0.000000e+00 : f32
    %25 = vector.broadcast %cst_8 : f32 to vector<16x16xf32>
    %26 = vector.extract_strided_slice %6 {offsets = [0, 0, 0], sizes = [1, 16, 16], strides = [1, 1, 1]} : vector<4x16x16xf32> to vector<1x16x16xf32>
    %27 = vector.shape_cast %26 : vector<1x16x16xf32> to vector<16x16xf32>
    %28 = arith.subf %27, %23 : vector<16x16xf32>
    %29 = math.exp %28 : vector<16x16xf32>
    %30 = arith.addf %24, %29 : vector<16x16xf32>
    %c0_i32_9 = arith.constant 0 : i32
    %31 = vector.broadcast %c0_i32_9 : i32 to vector<16x16xi32>
    %32 = arith.cmpi eq, %4, %31 : vector<16x16xi32>
    %33 = arith.select %32, %28, %25 : vector<16x16xi1>, vector<16x16xf32>
    %34 = vector.extract_strided_slice %6 {offsets = [1, 0, 0], sizes = [1, 16, 16], strides = [1, 1, 1]} : vector<4x16x16xf32> to vector<1x16x16xf32>
    %35 = vector.shape_cast %34 : vector<1x16x16xf32> to vector<16x16xf32>
    %36 = arith.subf %35, %23 : vector<16x16xf32>
    %37 = math.exp %36 : vector<16x16xf32>
    %38 = arith.addf %30, %37 : vector<16x16xf32>
    %c1_i32 = arith.constant 1 : i32
    %39 = vector.broadcast %c1_i32 : i32 to vector<16x16xi32>
    %40 = arith.cmpi eq, %4, %39 : vector<16x16xi32>
    %41 = arith.select %40, %36, %33 : vector<16x16xi1>, vector<16x16xf32>
    %42 = vector.extract_strided_slice %6 {offsets = [2, 0, 0], sizes = [1, 16, 16], strides = [1, 1, 1]} : vector<4x16x16xf32> to vector<1x16x16xf32>
    %43 = vector.shape_cast %42 : vector<1x16x16xf32> to vector<16x16xf32>
    %44 = arith.subf %43, %23 : vector<16x16xf32>
    %45 = math.exp %44 : vector<16x16xf32>
    %46 = arith.addf %38, %45 : vector<16x16xf32>
    %c2_i32 = arith.constant 2 : i32
    %47 = vector.broadcast %c2_i32 : i32 to vector<16x16xi32>
    %48 = arith.cmpi eq, %4, %47 : vector<16x16xi32>
    %49 = arith.select %48, %44, %41 : vector<16x16xi1>, vector<16x16xf32>
    %50 = vector.extract_strided_slice %6 {offsets = [3, 0, 0], sizes = [1, 16, 16], strides = [1, 1, 1]} : vector<4x16x16xf32> to vector<1x16x16xf32>
    %51 = vector.shape_cast %50 : vector<1x16x16xf32> to vector<16x16xf32>
    %52 = arith.subf %51, %23 : vector<16x16xf32>
    %53 = math.exp %52 : vector<16x16xf32>
    %54 = arith.addf %46, %53 : vector<16x16xf32>
    %c3_i32 = arith.constant 3 : i32
    %55 = vector.broadcast %c3_i32 : i32 to vector<16x16xi32>
    %56 = arith.cmpi eq, %4, %55 : vector<16x16xi32>
    %57 = arith.select %56, %52, %49 : vector<16x16xi1>, vector<16x16xf32>
    %58 = math.log %54 : vector<16x16xf32>
    %59 = arith.subf %58, %57 : vector<16x16xf32>
    %c-1_i32 = arith.constant -1 : i32
    %60 = vector.broadcast %c-1_i32 : i32 to vector<16x16xi32>
    %61 = arith.cmpi ne, %4, %60 : vector<16x16xi32>
    %62 = arith.andi %61, %12 : vector<16x16xi1>
    %c0_10 = arith.constant 0 : index
    %c0_11 = arith.constant 0 : index
    %c0_12 = arith.constant 0 : index
    %63 = vector.load %arg4[%c0_10, %c0_11, %c0_12] : memref<1x16x16xf32, #tpu.memory_space<vmem>>, vector<1x16x16xf32>
    %64 = vector.shape_cast %63 : vector<1x16x16xf32> to vector<16x16xf32>
    %cst_13 = arith.constant 0.000000e+00 : f32
    %65 = vector.broadcast %cst_13 : f32 to vector<16x16xf32>
    %66 = arith.select %62, %59, %65 : vector<16x16xi1>, vector<16x16xf32>
    %67 = arith.addf %64, %66 : vector<16x16xf32>
    %c0_14 = arith.constant 0 : index
    %c0_15 = arith.constant 0 : index
    %c0_16 = arith.constant 0 : index
    %68 = vector.load %arg4[%c0_14, %c0_15, %c0_16] : memref<1x16x16xf32, #tpu.memory_space<vmem>>, vector<1x16x16xf32>
    %69 = vector.shape_cast %68 : vector<1x16x16xf32> to vector<16x16xf32>
    %70 = vector.shape_cast %67 : vector<16x16xf32> to vector<1x16x16xf32>
    tpu.vector_store %arg4[%c0_14, %c0_15, %c0_16], %70 {strides = array<i32>} : memref<1x16x16xf32, #tpu.memory_space<vmem>>, vector<1x16x16xf32>,
    %c0_17 = arith.constant 0 : index
    %c0_18 = arith.constant 0 : index
    %c0_19 = arith.constant 0 : index
    %71 = vector.load %arg5[%c0_17, %c0_18, %c0_19] : memref<1x16x16xf32, #tpu.memory_space<vmem>>, vector<1x16x16xf32>
    %72 = vector.shape_cast %71 : vector<1x16x16xf32> to vector<16x16xf32>
    %73 = arith.extui %62 : vector<16x16xi1> to vector<16x16xi32>
    %74 = arith.sitofp %73 : vector<16x16xi32> to vector<16x16xf32>
    %75 = arith.addf %72, %74 : vector<16x16xf32>
    %c0_20 = arith.constant 0 : index
    %c0_21 = arith.constant 0 : index
    %c0_22 = arith.constant 0 : index
    %76 = vector.load %arg5[%c0_20, %c0_21, %c0_22] : memref<1x16x16xf32, #tpu.memory_space<vmem>>, vector<1x16x16xf32>
    %77 = vector.shape_cast %76 : vector<1x16x16xf32> to vector<16x16xf32>
    %78 = vector.shape_cast %75 : vector<16x16xf32> to vector<1x16x16xf32>
    tpu.vector_store %arg5[%c0_20, %c0_21, %c0_22], %78 {strides = array<i32>} : memref<1x16x16xf32, #tpu.memory_space<vmem>>, vector<1x16x16xf32>,
    return
  }
  func.func @transform_0(%arg0: i32, %arg1: i32) -> (i32, i32, i32, i32) {
    %c0_i32 = arith.constant 0 : i32
    %c0_i32_0 = arith.constant 0 : i32
    %c0_i32_1 = arith.constant 0 : i32
    return %arg0, %c0_i32, %arg1, %c0_i32_0 : i32, i32, i32, i32
  }
  func.func @transform_1(%arg0: i32, %arg1: i32) -> (i32, i32, i32) {
    %c0_i32 = arith.constant 0 : i32
    %c0_i32_0 = arith.constant 0 : i32
    return %arg0, %arg1, %c0_i32 : i32, i32, i32
  }
  func.func @transform_2(%arg0: i32, %arg1: i32) -> (i32, i32, i32) {
    %c0_i32 = arith.constant 0 : i32
    %c0_i32_0 = arith.constant 0 : i32
    %c0_i32_1 = arith.constant 0 : i32
    return %arg0, %c0_i32, %c0_i32_0 : i32, i32, i32
  }
  func.func @transform_3(%arg0: i32, %arg1: i32) -> (i32, i32, i32) {
    %c0_i32 = arith.constant 0 : i32
    %c0_i32_0 = arith.constant 0 : i32
    %c0_i32_1 = arith.constant 0 : i32
    return %arg0, %c0_i32, %c0_i32_0 : i32, i32, i32
  }
}

</mosaic_0001>

<bundles_post_ra>
// kernel: tpu_custom_call.1
= control target key start
LH: loop header
LB: loop body
LE: loop exit
PB: predicated region body
PF: predicated region fallthrough
CT: control target
= control target key end

     0   :  { %9 = vsyncpa [#allocation3], 0  ;;  %s1231_s0 = inlined_call_operand.hbm [shape: f32[2,4,16,16], index: 0, kind: input, shape index: {}]   ;;  %s1232_s1 = inlined_call_operand.hbm [shape: s32[2,16,16], index: 1, kind: input, shape index: {}]   ;;  %s1233_s2 = inlined_call_operand.hbm [shape: f32[2,16,16], index: 2, kind: output, shape index: {0}]   ;;  %s1234_s3 = inlined_call_operand.hbm [shape: f32[2,16,16], index: 3, kind: output, shape index: {1}]  }
   0x1   :  { %11 = vsyncpa [#allocation3 + $0x1], 0 }
   0x2   :  { %12 = vsyncpa [#allocation6], 0 }
   0x3   :  { %14 = vsyncpa [#allocation6 + $0x1], 0 }
   0x4   :  { %15 = vsyncpa [#allocation4], 0 }
   0x5   :  { %17 = vsyncpa [#allocation4 + $0x1], 0 }
   0x6   :  { %18 = vsyncpa [#allocation9], 0 }
   0x7   :  { %20 = vsyncpa [#allocation9 + $0x1], 0  ;;  %s885_s12 = smov 0   ;;  %s887_s13 = smov 0  }
   0x8   :  { %s889_s14 = smov 0   ;;  %s891_s15 = smov 0  }
   0x9   :  { %s893_s16 = smov 0   ;;  %s895_s17 = smov 0  }
   0xa LB: > { %s550_s18 = sadd.s32 4294967295, %s854_s17   ;;  %s551_s19 = sadd.s32 4294967294, %s854_s17   ;;  %s854_s17 = sphi %s895_s17, %s26_s17   ;;  %s850_s16 = sphi %s893_s16, %s1252_s16   ;;  %s846_s15 = sphi %s891_s15, %s1251_s15   ;;  %s842_s14 = sphi %s889_s14, %s1250_s14   ;;  %s838_s13 = sphi %s887_s13, %s1249_s13   ;;  %s834_s12 = sphi %s885_s12, %s1248_s12  }
   0xb   : > { %s38_s20 = sadd.s32 1, %s850_s16  ;;  %s47_s21 = sadd.s32 1, %s842_s14 }
   0xc   : > { %p40_p0 = scmp.ge.s32.totalorder %s38_s20, 2  ;;  %p54_p1 = scmp.ne.s32.totalorder %s842_s14, %s838_s13 }
   0xd   : > { %p55_p2 = scmp.eq.s32.totalorder %s854_s17, 0  ;;  %p60_p3 = scmp.ne.s32.totalorder %s838_s13, %s834_s12 }
   0xe   : > { %s1254_s20 = smov (%p40_p0, %s38_s20), 0  ;;  %p61_p5 = scmp.eq.s32.totalorder %s550_s18, 0 }
   0xf   : > { %p926_p4 = por %p55_p2, %p54_p1  ;;  %s42_s23 = ssub.s32 %s850_s16, %s1254_s20 }
  0x10   : > { %p112_p6 = scmp.eq.s32.totalorder %s550_s18, 1  ;;  %p45_p7 = scmp.eq.s32.totalorder %s42_s23, 0 }
  0x11   : > { %p932_p8 = por %p61_p5, %p60_p3  ;;  %p118_p10 = scmp.eq.s32.totalorder %s551_s19, 1 }
  0x12   : > { %p936_p9 = por %p112_p6, %p54_p1  ;;  %p601_p13 = scmp.lt.s32.totalorder %s854_s17, 2 }
  0x13   : > { %s1238_s24 = scalar_select %p932_p8, 1, 0 }
  0x14   : > { %s1239_s25 = scalar_select %p936_p9, 1, 0 }
  0x15   : > { %s941_s26 = scalar_select %p45_p7, %s842_s14, %s47_s21  }
  0x16   : > { %p943_p11 = por %p118_p10, %p60_p3  ;;  %s950_s28 = sand.u32 1, %s842_s14  }
  0x17   : > { %s554_s29 = sshll.u32 %s950_s28, 6  ;;  %s575_s30 = sshll.u32 %s850_s16, 10 }
  0x18   : > { %s1240_s27 = scalar_select %p943_p11, 1, 0 }
  0x19   : > { %s957_s6 = scalar_lea.hbm %s1231_s0, %s575_s30  ;;  %s168_s7 = scalar_lea.vmem [#allocation2], %s554_s29 }
  0x1a   : > { %s177_s8 = sshll.u32 %s168_s7, 4  ;;  %p963_p0 = pnand %p601_p13, %p926_p4  ;;  %s959_s8 = int_to_ptr.vmem [resolvable:$true] %s177_s8 }
  0x1b   : > { %s165_s10 = scalar_lea.sflag [#allocation3], %s950_s28  ;;  %s676_s11 = scalar_lea.hbm %s957_s6, 1024 }
  0x1c   : > { %p677_p2 = scmp.ne.s32.totalorder %s957_s6, %s676_s11  ;;  %p678_p3 = pneg %p963_p0 }
  0x1d   : > { %s681_s21 = scalar_lea.hbm %s1231_s0, 2048  ;;  %p682_p4 = scmp.lt.u32.totalorder %s957_s6, %s1231_s0 }
  0x1e   : > { %p679_p5 = pnand %p678_p3, %p677_p2  ;;  %p683_p7 = scmp.lt.u32.totalorder %s681_s21, %s676_s11 }
  0x1f   : > { %p685_p13 = scmp.lt.u32.totalorder %s676_s11, %s957_s6 }
  0x20   : > { %p680_p6 = pneg %p679_p5  ;;  %p684_p10 = por %p683_p7, %p682_p4 }
  0x22   : > { %p686_p12 = por %p685_p13, %p684_p10 }
  0x24   : > { %p687_p1 = pnand %p686_p12, %p680_p6 }
  0x26   : > { %690 = shalt.err (!%p687_p1)
}
  0x27   : > { %s691_s29 = scalar_lea.vmem %s959_s8, 1024  ;;  %s856_s30 = smov [#allocation2]  }
  0x28   : > { %p692_p2 = scmp.ne.s32.totalorder %s959_s8, %s691_s29  ;;  %s696_s4 = sshll.u32 %s856_s30, 4  ;;  %s697_s4 = int_to_ptr.vmem [resolvable:$false] %s696_s4 }
  0x29   : > { %s698_s5 = scalar_lea.vmem %s697_s4, 2048  ;;  %p699_p9 = scmp.lt.s32.totalorder %s959_s8, %s697_s4 }
  0x2a   : > { %p694_p5 = pnand %p692_p2, %p678_p3  ;;  %p700_p4 = scmp.lt.s32.totalorder %s698_s5, %s691_s29 }
  0x2c   : > { %p695_p11 = pneg %p694_p5  ;;  %p701_p7 = por %p700_p4, %p699_p9 }
  0x2e   : > { %p702_p10 = pnand %p701_p7, %p695_p11 }
  0x30   : > { %705 = shalt.err (!%p702_p10)
}
  0x31   : > { %s857_s7 = smov 128   ;;  %s858_s11 = smov 8  }
  0x32   : > { %590 = dma.hbm_to_vmem [thread:$0]  (!%p963_p0), %s957_s6, 1024, %s959_s8, %s165_s10, %s857_s7, %s857_s7, %s858_s11  }
  0x33   : > { %p208_p9 = scmp.lt.s32.totalorder %s854_s17, 3  ;;  %s557_s18 = sshll.u32 %s950_s28, 4 }
  0x34   : > { %s576_s19 = sshll.u32 %s850_s16, 8  ;;  %p1242_p11 = scmp.ge.s32.totalorder %s854_s17, 1 }
  0x35   : > { %s1011_s29 = scalar_lea.hbm %s1232_s1, %s576_s19  ;;  %s191_s30 = scalar_lea.vmem [#allocation5], %s557_s18 }
  0x36   : > { %p1004_p12 = pnand %p1242_p11, %p208_p9  ;;  %s200_s4 = sshll.u32 %s191_s30, 4  ;;  %s1013_s4 = int_to_ptr.vmem [resolvable:$true] %s200_s4 }
  0x37   : > { %s188_s6 = scalar_lea.sflag [#allocation6], %s950_s28  ;;  %s706_s8 = scalar_lea.hbm %s1011_s29, 256 }
  0x38   : > { %p707_p1 = scmp.ne.s32.totalorder %s1011_s29, %s706_s8  ;;  %s711_s19 = scalar_lea.hbm %s1232_s1, 512 }
  0x39   : > { %p712_p2 = scmp.lt.u32.totalorder %s1011_s29, %s1232_s1  ;;  %p713_p5 = scmp.lt.u32.totalorder %s711_s19, %s706_s8 }
  0x3a   : > { %p709_p6 = pnand %p707_p1, %p678_p3  ;;  %p715_p7 = scmp.lt.u32.totalorder %s706_s8, %s1011_s29 }
  0x3b   : > { %p714_p4 = por %p713_p5, %p712_p2 }
  0x3c   : > { %p710_p13 = pneg %p709_p6 }
  0x3d   : > { %p716_p10 = por %p715_p7, %p714_p4 }
  0x3f   : > { %p717_p9 = pnand %p716_p10, %p710_p13 }
  0x41   : > { %720 = shalt.err (!%p717_p9)
}
  0x42   : > { %s721_s18 = scalar_lea.vmem %s1013_s4, 256  ;;  %s859_s30 = smov [#allocation5]  }
  0x43   : > { %p722_p11 = scmp.ne.s32.totalorder %s1013_s4, %s721_s18  ;;  %s726_s10 = sshll.u32 %s859_s30, 4  ;;  %s727_s10 = int_to_ptr.vmem [resolvable:$false] %s726_s10 }
  0x44   : > { %s728_s5 = scalar_lea.vmem %s727_s10, 512  ;;  %p729_p8 = scmp.lt.s32.totalorder %s1013_s4, %s727_s10 }
  0x45   : > { %p724_p1 = pnand %p722_p11, %p678_p3  ;;  %p730_p2 = scmp.lt.s32.totalorder %s728_s5, %s721_s18 }
  0x47   : > { %p725_p6 = pneg %p724_p1  ;;  %p731_p5 = por %p730_p2, %p729_p8 }
  0x49   : > { %p732_p4 = pnand %p731_p5, %p725_p6 }
  0x4b   : > { %735 = shalt.err (!%p732_p4)
}
  0x4c   : > { %593 = dma.hbm_to_vmem [thread:$0]  (!%p963_p0), %s1011_s29, 256, %s1013_s4, %s188_s6, %s857_s7, %s857_s7, %s858_s11  }
  0x4d   : > { %212 = sbr.rel (%p1004_p12) target bundleno = 167 (0xa7), region = 28  ;;  %s1047_s8 = sand.u32 (!%p1004_p12), 1, %s838_s13  }
  0x4e   : > { %s561_s19 = sshll.u32 (!%p1004_p12), %s1047_s8, 6  ;;  %s215_s22 = scalar_lea.sflag (!%p1004_p12), [#allocation3], %s1047_s8 }
  0x4f   : > { %s1051_s9 = scalar_lea.vmem (!%p1004_p12), [#allocation2], %s561_s19  ;;  %p1244_p8 = scmp.ne.s32.totalorder (!%p1004_p12), %s1238_s24, 0 }
  0x54   : > { %817 = dma.done.wait (%p1244_p8), %s215_s22, 1024  }
  0x55   : > { %819 = vsyncadd (%p1244_p8), %s215_s22, 4294966272  ;;  %s562_s28 = sshll.u32 %s1047_s8, 4  ;;  %s224_s7 = scalar_lea.sflag [#allocation6], %s1047_s8 }
  0x56   : > { %s227_s11 = scalar_lea.vmem [#allocation5], %s562_s28 }
  0x57   : > { %821 = dma.done.wait (%p1244_p8), %s224_s7, 256  }
  0x58   : > { %823 = vsyncadd (%p1244_p8), %s224_s7, 4294967040  ;;  %vm266_vm0 = vcmask 130048   ;;  %s1063_s21 = scalar_lea.vmem [#allocation7], %s562_s28  ;;  %v860_v0 = vmov 0.0   ;;  %s1069_s29 = scalar_lea.vmem [#allocation8], %s562_s28  ;;  %v273_v1 = vld [vmem:[%s1051_s9] sm:$0xff] }
  0x59   : > { %267 = vst.msk [vmem:[%s1063_s21] sm:$0xff] %vm266_vm0, %v860_v0  ;;  %268 = vst.msk [vmem:[%s1063_s21 + $0x8] sm:$0xff] %vm266_vm0, %v860_v0  ;;  %v275_v2 = vld [vmem:[%s1051_s9 + $0x10] sm:$0xff]  ;;  %v277_v4 = vld [vmem:[%s1051_s9 + $0x20] sm:$0xff]  ;;  %s577_s24 = sshll.u32 %s846_s15, 8  ;;  %s408_s4 = sshll.u32 %s1069_s29, 4  ;;  %s1104_s4 = int_to_ptr.vmem [resolvable:$true] %s408_s4 }
  0x5a   : > { %269 = vst.msk [vmem:[%s1069_s29] sm:$0xff] %vm266_vm0, %v860_v0  ;;  %270 = vst.msk [vmem:[%s1069_s29 + $0x8] sm:$0xff] %vm266_vm0, %v860_v0  ;;  %v1077_v3 = vld [vmem:[%s227_s11] sm:$0xff]  ;;  %v290_v5 = vmax.f32 %v273_v1, %v275_v2  ;;  %v274_v7 = vld [vmem:[%s1051_s9 + $0x8] sm:$0xff]  ;;  %s1102_s18 = scalar_lea.hbm %s1234_s3, %s577_s24  ;;  %s379_s30 = scalar_lea.sflag [#allocation9], %s1047_s8 }
  0x5b   : > { %v279_v6 = vld [vmem:[%s1051_s9 + $0x30] sm:$0xff]  ;;  %vm350_vm1 = vcmp.ne.s32.totalorder %v1077_v3, 4294967295  ;;  %v276_v8 = vld [vmem:[%s1051_s9 + $0x18] sm:$0xff]  ;;  %v278_v11 = vld [vmem:[%s1051_s9 + $0x28] sm:$0xff]  ;;  %s736_s10 = scalar_lea.vmem %s1104_s4, 256  ;;  %p1245_p3 = scmp.ne.s32.totalorder %s1239_s25, 0 }
  0x5c   : > { %v292_v9 = vmax.f32 %v290_v5, %v277_v4  ;;  %v1084_v10 = vld [vmem:[%s227_s11 + $0x8] sm:$0xff]  ;;  %v291_v12 = vmax.f32 %v274_v7, %v276_v8  ;;  %v565_v14 = vsel %vm350_vm1, 1.0, %v860_v0  ;;  %p737_p0 = scmp.ne.s32.totalorder %s1104_s4, %s736_s10  ;;  %s861_s5 = smov [#allocation8]  }
  0x5d   : > { %vm351_vm2 = vcmp.ne.s32.totalorder %v1084_v10, 4294967295  ;;  %v280_v17 = vld [vmem:[%s1051_s9 + $0x38] sm:$0xff]  ;;  %s740_s19 = sshll.u32 %s861_s5, 4  ;;  %s741_s19 = int_to_ptr.vmem [resolvable:$false] %s740_s19 }
  0x5e   : > { %v294_v16 = vmax.f32 %v292_v9, %v279_v6  ;;  %v293_v18 = vmax.f32 %v291_v12, %v278_v11  ;;  %v566_v20 = vsel %vm351_vm2, 1.0, %v860_v0  ;;  %p738_p12 = pnand %p737_p0, %p1245_p3  ;;  %s742_s22 = scalar_lea.vmem %s741_s19, 512 }
  0x5f   : > { %p743_p7 = scmp.lt.s32.totalorder %s1104_s4, %s741_s19  ;;  %p744_p10 = scmp.lt.s32.totalorder %s742_s22, %s736_s10 }
  0x60   : > { %v1106_v22 = vsub.f32 %v273_v1, %v294_v16  ;;  %v1108_v23 = vsub.f32 %v275_v2, %v294_v16  ;;  %v1110_v24 = vsub.f32 %v277_v4, %v294_v16  ;;  %v1112_v25 = vsub.f32 %v279_v6, %v294_v16  ;;  %p739_p13 = pneg %p738_p12 }
  0x61   : > { %v363_v13 = vld [vmem:[%s1069_s29] sm:$0xff]  ;;  %v364_v15 = vld [vmem:[%s1069_s29 + $0x8] sm:$0xff]  ;;  %v295_v26 = vmax.f32 %v293_v18, %v280_v17  ;;  %p745_p9 = por %p744_p10, %p743_p7 }
  0x62   : > { %v369_v19 = vadd.f32 %v565_v14, %v363_v13  ;;  %v370_v21 = vadd.f32 %v566_v20, %v364_v15  ;;  %v298_v27 = vmul.f32 1.442695, %v1106_v22  ;;  %v310_v28 = vmul.f32 1.442695, %v1108_v23 }
  0x63   : > { %p746_p11 = pnand %p745_p9, %p739_p13 }
  0x64   : > { %371 = vst.msk [vmem:[%s1069_s29] sm:$0xff] %vm266_vm0, %v369_v19  ;;  %372 = vst.msk [vmem:[%s1069_s29 + $0x8] sm:$0xff] %vm266_vm0, %v370_v21 }
  0x65   : > { %749 = shalt.err (!%p746_p11)
}
  0x66   : > { %s750_s9 = scalar_lea.hbm %s1102_s18, 256  ;;  %s754_s11 = scalar_lea.hbm %s1234_s3, 512 }
  0x67   : > { %p751_p1 = scmp.ne.s32.totalorder %s1102_s18, %s750_s9  ;;  %p755_p5 = scmp.lt.u32.totalorder %s1102_s18, %s1234_s3 }
  0x68   : > { %p756_p4 = scmp.lt.u32.totalorder %s754_s11, %s750_s9  ;;  %p758_p0 = scmp.lt.u32.totalorder %s750_s9, %s1102_s18 }
  0x69   : > { %p752_p6 = pnand %p751_p1, %p1245_p3 }
  0x6a   : > { %p757_p8 = por %p756_p4, %p755_p5 }
  0x6b   : > { %p753_p2 = pneg %p752_p6 }
  0x6c   : > { %p759_p12 = por %p758_p0, %p757_p8 }
  0x6e   : > { %p760_p13 = pnand %p759_p12, %p753_p2 }
  0x70   : > { %763 = shalt.err (!%p760_p13)
}
  0x71   : > { %s862_s23 = smov 128   ;;  %s863_s10 = smov 8   ;;  %v322_v29 = vmul.f32 1.442695, %v1110_v24  ;;  %v334_v30 = vmul.f32 1.442695, %v1112_v25  ;;  %v297_v31 = vsub.f32 %v274_v7, %v295_v26  ;;  %656 = vpow2.f32 %v298_v27 }
  0x72   : > { %584 = dma.vmem_to_hbm [thread:$0]  (%p1245_p3), %s1104_s4, 256, %s1102_s18, %s379_s30, %s862_s23, %s862_s23, %s863_s10   ;;  %v309_v32 = vsub.f32 %v276_v8, %v295_v26  ;;  %v321_v33 = vsub.f32 %v278_v11, %v295_v26  ;;  %658 = vpow2.f32 %v310_v28  ;;  %v333_v37 = vsub.f32 %v280_v17, %v295_v26 }
  0x73   : > { %v300_v34 = vmul.f32 1.442695, %v297_v31  ;;  %660 = vpow2.f32 %v322_v29  ;;  %vm304_vm3 = vcmp.eq.s32.totalorder %v1077_v3, 0  ;;  %vm316_vm4 = vcmp.eq.s32.totalorder %v1077_v3, 1  ;;  %v354_v63 = vld [vmem:[%s1063_s21] sm:$0xff]  ;;  %v355_v7 = vld [vmem:[%s1063_s21 + $0x8] sm:$0xff]  ;;  %s1175_s5 = scalar_lea.hbm %s1233_s2, %s577_s24 }
  0x74   : > { %v312_v35 = vmul.f32 1.442695, %v309_v32  ;;  %v324_v36 = vmul.f32 1.442695, %v321_v33  ;;  %662 = vpow2.f32 %v334_v30  ;;  %v336_v38 = vmul.f32 1.442695, %v333_v37 }
  0x75   : > { %664 = vpow2.f32 %v300_v34  ;;  %v306_v52 = vsel %vm304_vm3, %v1106_v22, 0.0  ;;  %vm305_vm5 = vcmp.eq.s32.totalorder %v1084_v10, 0  ;;  %vm328_vm6 = vcmp.eq.s32.totalorder %v1077_v3, 2  ;;  %s392_s4 = sshll.u32 %s1063_s21, 4  ;;  %s374_s19 = scalar_lea.sflag [#allocation4], %s1047_s8  ;;  %s1177_s4 = int_to_ptr.vmem [resolvable:$true] %s392_s4 }
  0x76   : > { %666 = vpow2.f32 %v312_v35  ;;  %v318_v54 = vsel %vm316_vm4, %v1108_v23, %v306_v52  ;;  %v307_v55 = vsel %vm305_vm5, %v297_v31, 0.0  ;;  %vm317_vm7 = vcmp.eq.s32.totalorder %v1084_v10, 1  ;;  %s764_s22 = scalar_lea.vmem %s1177_s4, 256  ;;  %s864_s9 = smov [#allocation7]  }
  0x77   : > { %668 = vpow2.f32 %v324_v36  ;;  %v330_v56 = vsel %vm328_vm6, %v1110_v24, %v318_v54  ;;  %vm340_vm8 = vcmp.eq.s32.totalorder %v1077_v3, 3  ;;  %v319_v57 = vsel %vm317_vm7, %v309_v32, %v307_v55  ;;  %p765_p7 = scmp.ne.s32.totalorder %s1177_s4, %s764_s22  ;;  %s768_s15 = sshll.u32 %s864_s9, 4  ;;  %s769_s15 = int_to_ptr.vmem [resolvable:$false] %s768_s15 }
  0x78   : > { %670 = vpow2.f32 %v336_v38  ;;  %vm329_vm9 = vcmp.eq.s32.totalorder %v1084_v10, 2  ;;  %v342_v59 = vsel %vm340_vm8, %v1112_v25, %v330_v56  ;;  %vm341_vm10 = vcmp.eq.s32.totalorder %v1084_v10, 3  ;;  %s770_s28 = scalar_lea.vmem %s769_s15, 512  ;;  %p771_p11 = scmp.lt.s32.totalorder %s1177_s4, %s769_s15 }
  0x79   : > { %v331_v61 = vsel %vm329_vm9, %v321_v33, %v319_v57  ;;  %p766_p10 = pnand %p765_p7, %p1245_p3  ;;  %p772_p1 = scmp.lt.s32.totalorder %s770_s28, %s764_s22 }
  0x7a   : > { %v343_v1 = vsel %vm341_vm10, %v333_v37, %v331_v61 }
  0x7b   : > { %v657_v39 = vpop.eup %656  ;;  %p767_p9 = pneg %p766_p10  ;;  %p773_p6 = por %p772_p1, %p771_p11 }
  0x7c   : > { %v659_v40 = vpop.eup %658 }
  0x7d   : > { %v661_v41 = vpop.eup %660  ;;  %v314_v42 = vadd.f32 %v659_v40, %v657_v39  ;;  %p774_p2 = pnand %p773_p6, %p767_p9 }
  0x7e   : > { %v663_v43 = vpop.eup %662 }
  0x7f   : > { %v665_v44 = vpop.eup %664  ;;  %v326_v45 = vadd.f32 %v661_v41, %v314_v42 }
  0x80   : > { %v667_v46 = vpop.eup %666 }
  0x81   : > { %v669_v47 = vpop.eup %668  ;;  %v338_v48 = vadd.f32 %v663_v43, %v326_v45  ;;  %v315_v49 = vadd.f32 %v667_v46, %v665_v44 }
  0x82   : > { %v671_v50 = vpop.eup %670 }
  0x83   : > { %672 = vlog2.f32 %v338_v48  ;;  %v327_v51 = vadd.f32 %v669_v47, %v315_v49 }
  0x85   : > { %v339_v53 = vadd.f32 %v671_v50, %v327_v51 }
  0x87   : > { %674 = vlog2.f32 %v339_v53 }
  0x8d   : > { %v673_v58 = vpop.eup %672 }
  0x8e   : > { %v345_v60 = vmul.f32 0.6931472, %v673_v58 }
  0x90   : > { %v348_v62 = vsub.f32 %v345_v60, %v342_v59 }
  0x91   : > { %v675_v0 = vpop.eup %674 }
  0x92   : > { %v356_v2 = vsel %vm350_vm1, %v348_v62, 0.0  ;;  %v347_v4 = vmul.f32 0.6931472, %v675_v0 }
  0x93   : > { %v358_v5 = vadd.f32 %v356_v2, %v354_v63 }
  0x94   : > { %v349_v6 = vsub.f32 %v347_v4, %v343_v1 }
  0x95   : > { %361 = vst.msk [vmem:[%s1063_s21] sm:$0xff] %vm266_vm0, %v358_v5 }
  0x96   : > { %v357_v8 = vsel %vm351_vm2, %v349_v6, 0.0 }
  0x97   : > { %v359_v9 = vadd.f32 %v357_v8, %v355_v7 }
  0x99   : > { %362 = vst.msk [vmem:[%s1063_s21 + $0x8] sm:$0xff] %vm266_vm0, %v359_v9 }
  0x9a   : > { %777 = shalt.err (!%p774_p2)
}
  0x9b   : > { %s778_s21 = scalar_lea.hbm %s1175_s5, 256  ;;  %s782_s11 = scalar_lea.hbm %s1233_s2, 512 }
  0x9c   : > { %p779_p5 = scmp.ne.s32.totalorder %s1175_s5, %s778_s21  ;;  %p783_p0 = scmp.lt.u32.totalorder %s1175_s5, %s1233_s2 }
  0x9d   : > { %p784_p12 = scmp.lt.u32.totalorder %s782_s11, %s778_s21  ;;  %p786_p7 = scmp.lt.u32.totalorder %s778_s21, %s1175_s5 }
  0x9e   : > { %p780_p4 = pnand %p779_p5, %p1245_p3 }
  0x9f   : > { %p785_p13 = por %p784_p12, %p783_p0 }
  0xa0   : > { %p781_p8 = pneg %p780_p4 }
  0xa1   : > { %p787_p10 = por %p786_p7, %p785_p13 }
  0xa3   : > { %p788_p9 = pnand %p787_p10, %p781_p8 }
  0xa5   : > { %791 = shalt.err (!%p788_p9)
}
  0xa6   : > { %583 = dma.vmem_to_hbm [thread:$0]  (%p1245_p3), %s1177_s4, 256, %s1175_s5, %s374_s19, %s862_s23, %s862_s23, %s863_s10  }
  0xa7 PF: > { %s423_s18 = sand.u32 1, %s834_s12   ;;  %p1246_p11 = scmp.ne.s32.totalorder %s1240_s27, 0 }
  0xa8   : > { %p1247_p1 = scmp.ge.s32.totalorder %s854_s17, 2  ;;  %s424_s30 = scalar_lea.sflag [#allocation4], %s423_s18 }
  0xaa   : > { %p595_p6 = pnand %p1247_p1, %p1246_p11 }
  0xac   : > { %825 = dma.done.wait (!%p595_p6), %s424_s30, 256  }
  0xad   : > { %827 = vsyncadd (!%p595_p6), %s424_s30, 4294967040  ;;  %s433_s25 = scalar_lea.sflag [#allocation9], %s423_s18 }
  0xae   : > { %829 = dma.done.wait (!%p595_p6), %s433_s25, 256  }
  0xaf   : > { %831 = vsyncadd (!%p595_p6), %s433_s25, 4294967040  ;;  %s26_s17 = sadd.s32 1, %s854_s17   ;;  %s1248_s12 = smov %s838_s13 }
  0xb0   : > { %p23_p2 = scmp.ge.s32.totalorder %s26_s17, 4   ;;  %s1249_s13 = smov %s842_s14 }
  0xb1   : > { %s1250_s14 = smov %s941_s26  ;;  %s1251_s15 = smov %s850_s16 }
  0xb2   : > { %s1252_s16 = smov %s1254_s20  ;;  %25 = sbr.rel (!%p23_p2) target bundleno = 10 (0xa), region = 107 }
  0xb9   :  { %438 = vsyncpa [#allocation3], 1 }
  0xba   :  { %440 = vsyncpa [#allocation3 + $0x1], 1 }
  0xbb   :  { %441 = vsyncpa [#allocation6], 1 }
  0xbc   :  { %443 = vsyncpa [#allocation6 + $0x1], 1 }
  0xbd   :  { %444 = vsyncpa [#allocation4], 1 }
  0xbe   :  { %446 = vsyncpa [#allocation4 + $0x1], 1 }
  0xbf   :  { %447 = vsyncpa [#allocation9], 1 }
  0xc0   :  { %449 = vsyncpa [#allocation9 + $0x1], 1 }

</bundles_post_ra>
